<compile_context>
chip_gen: v7x
topology: tpu7x:2x2x1
jax: 0.10.0
libtpu: 0.0.40
codegen_flags: <defaults>
</compile_context>

<pallas_src>
import functools

import jax
import jax.numpy as jnp
import numpy as np
from jax import lax
from jax.experimental import pallas as pl
from jax.experimental.pallas import tpu as pltpu


_MIB = 1024 * 1024
_SINGLE_BLOCK_BYTES = 2 * _MIB      # below this, one whole-array block
_PREFER_GATHER = [True]             # flips off if the gather lowering is rejected


def _round_up(n, m):
    return ((n + m - 1) // m) * m


# ---------------------------------------------------------------------------
# Kernels
# ---------------------------------------------------------------------------
def _gather_kernel(x_ref, o_ref, *, idx):
    """Exact static-column gather along the lane (last) dim.  No MXU."""
    o_ref[...] = jnp.take(x_ref[...], idx, axis=-1, mode="clip")


def _onehot_matmul_kernel(x_ref, sel_ref, o_ref):
    """Fallback: gather as a one-hot MXU matmul (floating dtypes only)."""
    o_ref[...] = jnp.dot(
        x_ref[...], sel_ref[...],
        preferred_element_type=jnp.float32,
        precision=lax.Precision.HIGHEST,
    ).astype(o_ref.dtype)


# ---------------------------------------------------------------------------
# Tiling helpers
# ---------------------------------------------------------------------------
def _vmem_budget_bytes():
    cap = 64 * _MIB                              # v7x-safe fallback
    try:
        cap = int(getattr(pltpu.get_tpu_info(), "vmem_capacity_bytes", cap))
    except Exception:
        pass
    # ~75% of physical VMEM, capped: 48 MiB on v7x, 96 MiB on v5e/v6e.
    return min(96 * _MIB, (3 * cap) // 4)


def _choose_tile(n_rows, per_row_vmem, real_row_bytes, budget):
    """Rows per grid step, sized in bytes against the VMEM budget."""
    max_rows = max(8, ((budget // per_row_vmem) // 8) * 8)
    if n_rows <= max_rows and (n_rows * real_row_bytes <= _SINGLE_BLOCK_BYTES
                               or n_rows <= 8):
        return n_rows                            # single whole-array block
    # >= 2 steps so the "parallel" axis can shard across TensorCores (v7x
    # megacore), capped so double-buffered in+out blocks fit the VMEM budget.
    return max(8, min(max_rows, _round_up(pl.cdiv(n_rows, 2), 8)))


# ---------------------------------------------------------------------------
# Forward
# ---------------------------------------------------------------------------
def index_select_forward(x, obs=None, *, indices, base_state_len=None):
    """Pallas TPU implementation of IndexSelect.forward(x, obs)."""
    del obs  # unused, exactly as in the PyTorch module

    idx = tuple(int(i) for i in np.asarray(indices, dtype=np.int64).reshape(-1))
    f_full = int(x.shape[-1])
    offset = int(base_state_len) if base_state_len is not None else 0
    eff = tuple(offset + i for i in idx)         # fold x[..., base:] into the gather
    k = len(eff)

    lead = x.shape[:-1]
    if k == 0:
        return jnp.zeros(lead + (0,), dtype=x.dtype)
    for e in eff:
        if not 0 <= e < f_full:
            raise ValueError(f"index {e} out of range for last dim {f_full}")

    # Flatten leading dims -> (B, F).  Contiguous reshape: no data movement.
    b = int(np.prod(lead)) if lead else 1
    x2 = x.reshape(b, f_full)

    # Pack g logical rows per kernel row when F < 128 (g must divide B so the
    # reshape stays a free, contiguous one).
    g = 1
    if f_full < 128 and b > 1:
        for cand in range(min(128 // f_full, b), 1, -1):
            if b % cand == 0:
                g = cand
                break
    n = b // g
    fp = g * f_full                              # packed feature width (lanes)
    kp = g * k                                   # packed output width (lanes)
    x2 = x2.reshape(n, fp)

    # Gather indices in the packed layout (static, baked into the kernel).
    idx_packed = np.asarray(
        [r * f_full + e for r in range(g) for e in eff], dtype=np.int32)

    itemsize = jnp.dtype(x.dtype).itemsize
    lane_f = _round_up(fp, 128)                  # lane-padded widths in VMEM
    lane_k = _round_up(kp, 128)
    budget = _vmem_budget_bytes()
    per_row_vmem = 2 * (lane_f + lane_k) * itemsize   # double-buffered in + out
    tile = _choose_tile(n, per_row_vmem, fp * itemsize, budget)
    grid = (pl.cdiv(n, tile),)

    vmem_need = _round_up(tile, 8) * per_row_vmem
    vmem_limit = int(min(budget, max(vmem_need + 4 * _MIB, 32 * _MIB)))

    cost = pl.CostEstimate(
        flops=0, transcendentals=0,
        bytes_accessed=itemsize * (b * f_full + b * k))

    common = dict(
        out_shape=jax.ShapeDtypeStruct((n, kp), x.dtype),
        grid=grid,
        out_specs=pl.BlockSpec((tile, kp), lambda i: (i, 0)),
        compiler_params=pltpu.CompilerParams(
            dimension_semantics=("parallel",),
            vmem_limit_bytes=vmem_limit),
        cost_estimate=cost,
    )
    x_spec = pl.BlockSpec((tile, fp), lambda i: (i, 0))

    out2 = None
    if _PREFER_GATHER[0]:
        try:
            out2 = pl.pallas_call(
                functools.partial(_gather_kernel, idx=idx_packed),
                in_specs=[x_spec], **common)(x2)
        except Exception:
            _PREFER_GATHER[0] = False            # gather lowering unavailable here

    if out2 is None:
        # One-hot MXU matmul fallback (known-good lowering).
        # TODO(synk): unlike torch.index_select this multiplies unselected
        # columns by 0, so Inf/NaN elsewhere in a row can contaminate its
        # outputs, and it requires a floating dtype.
        if not jnp.issubdtype(x.dtype, jnp.floating):
            raise NotImplementedError(
                "index_select_forward fallback path supports floating dtypes only")
        sel_np = np.zeros((fp, kp), dtype=np.float32)
        sel_np[idx_packed, np.arange(kp)] = 1.0
        sel = jnp.asarray(sel_np, dtype=x.dtype)
        out2 = pl.pallas_call(
            _onehot_matmul_kernel,
            in_specs=[x_spec, pl.BlockSpec((fp, kp), lambda i: (0, 0))],
            **common)(x2, sel)

    return out2.reshape(lead + (k,))


# Pure-JAX reference for verification.
def index_select_ref(x, indices, base_state_len=None):
    if base_state_len is not None:
        x = x[..., base_state_len:]
    return jnp.take(x, jnp.asarray(indices, dtype=jnp.int32), axis=-1)


if __name__ == "__main__":
    key = jax.random.PRNGKey(0)
    k_x, k_obs, k_big = jax.random.split(key, 3)

    # Shapes consistent with the module: x is (batch, seq, features);
    # base_state_len trims the base-state prefix, indices pick joint pos/vel.
    batch, seq, feat = 2, 5, 24
    base_state_len = 4
    indices = [0, 2, 3, 5, 7, 8, 10, 12, 13, 15, 17, 19]   # into trimmed dim (20)

    x = jax.random.normal(k_x, (batch, seq, feat), dtype=jnp.float32)
    obs = jax.random.normal(k_obs, (batch, seq, feat), dtype=jnp.float32)  # unused

    # Path 1: with base_state_len trimming (the get_joint_pos_vel branch).
    out = index_select_forward(x, obs, indices=indices,
                               base_state_len=base_state_len)
    out = jax.block_until_ready(out)
    ref = index_select_ref(x, indices, base_state_len)
    assert out.shape == (batch, seq, len(indices))
    np.testing.assert_allclose(np.asarray(out), np.asarray(ref),
                               rtol=1e-6, atol=1e-7)

    # Path 2: base_state_len=None, with a repeated index.
    idx2 = [1, 0, 23, 7, 1]
    out2 = jax.block_until_ready(
        index_select_forward(x, obs, indices=idx2, base_state_len=None))
    np.testing.assert_allclose(np.asarray(out2),
                               np.asarray(index_select_ref(x, idx2, None)),
                               rtol=1e-6, atol=1e-7)

    # Path 3: larger flattened batch -> exercises row packing, the multi-step
    # "parallel" grid and the ragged (masked) final block.
    big_b = 32770
    xb = jax.random.normal(k_big, (big_b, feat), dtype=jnp.float32)
    idx3 = [19, 3, 11, 0, 7, 2]
    out3 = jax.block_until_ready(
        index_select_forward(xb, None, indices=idx3, base_state_len=2))
    np.testing.assert_allclose(np.asarray(out3),
                               np.asarray(index_select_ref(xb, idx3, 2)),
                               rtol=1e-6, atol=1e-7)

    print("KERNEL_OK")
</pallas_src>

<mosaic_0001>
module attributes {stable_mosaic.version = 11 : i64} {
  func.func @_onehot_matmul_kernel(%arg0: i32, %arg1: memref<2x120xf32, #tpu.memory_space<vmem>>, %arg2: memref<120x60xf32, #tpu.memory_space<vmem>>, %arg3: memref<2x60xf32, #tpu.memory_space<vmem>>) attributes {dimension_semantics = [#tpu.dimension_semantics<parallel>], iteration_bounds = array<i64: 1>, scalar_prefetch = 0 : i64, scratch_operands = 0 : i64, tpu.core_type = #tpu.core_type<tc>, window_params = [{transform_indices = @transform_0, window_bounds = array<i64: 2, 120>}, {pipeline_mode = #tpu.pipeline_mode<synchronous>, transform_indices = @transform_1, window_bounds = array<i64: 120, 60>}, {transform_indices = @transform_2, window_bounds = array<i64: 2, 60>}]} {
    %c0 = arith.constant 0 : index
    %c0_0 = arith.constant 0 : index
    %0 = vector.load %arg1[%c0, %c0_0] : memref<2x120xf32, #tpu.memory_space<vmem>>, vector<2x120xf32>
    %c0_1 = arith.constant 0 : index
    %c0_2 = arith.constant 0 : index
    %1 = vector.load %arg2[%c0_1, %c0_2] : memref<120x60xf32, #tpu.memory_space<vmem>>, vector<120x60xf32>
    %cst = arith.constant dense<0.000000e+00> : vector<2x60xf32>
    %2 = tpu.matmul %0, %1, %cst {dimension_numbers = #tpu.dot_dimension_numbers<[1], [0], [0], [1], [0, 0, 1, 1], [], []>, precision = #tpu.contract_precision<fp32>} : vector<2x120xf32>, vector<120x60xf32>, vector<2x60xf32> -> vector<2x60xf32>
    %c0_3 = arith.constant 0 : index
    %c0_4 = arith.constant 0 : index
    %3 = vector.load %arg3[%c0_3, %c0_4] : memref<2x60xf32, #tpu.memory_space<vmem>>, vector<2x60xf32>
    tpu.vector_store %arg3[%c0_3, %c0_4], %2 {strides = array<i32>} : memref<2x60xf32, #tpu.memory_space<vmem>>, vector<2x60xf32>,
    return
  }
  func.func @transform_0(%arg0: i32) -> (i32, i32) {
    %c0_i32 = arith.constant 0 : i32
    %c0_i32_0 = arith.constant 0 : i32
    return %arg0, %c0_i32 : i32, i32
  }
  func.func @transform_1(%arg0: i32) -> (i32, i32) {
    %c0_i32 = arith.constant 0 : i32
    %c0_i32_0 = arith.constant 0 : i32
    %c0_i32_1 = arith.constant 0 : i32
    return %c0_i32, %c0_i32_0 : i32, i32
  }
  func.func @transform_2(%arg0: i32) -> (i32, i32) {
    %c0_i32 = arith.constant 0 : i32
    %c0_i32_0 = arith.constant 0 : i32
    return %arg0, %c0_i32 : i32, i32
  }
}

</mosaic_0001>

<bundles_post_ra>
// kernel: tpu_custom_call.1
= control target key start
LH: loop header
LB: loop body
LE: loop exit
PB: predicated region body
PF: predicated region fallthrough
CT: control target
= control target key end

     0   :  { %v1133_v3 = vmov 0.0|0.0   ;;  %vm1134_vm0 = vmmov 0   ;;  %v1135_v11 = vmov 0.0   ;;  %s1423_s0 = inlined_call_operand.vmem [shape: f32[2,120], index: 0, kind: input, shape index: {}]   ;;  %s1424_s1 = inlined_call_operand.vmem [shape: f32[120,60], index: 1, kind: input, shape index: {}]   ;;  %s1425_s2 = inlined_call_operand.hbm [shape: f32[2,60], index: 2, kind: output, shape index: {}]  }
   0x1   :  { %v13_v0 = vld [vmem:[%s1424_s1] sm:$0xff]  ;;  %v14_v1 = vld [vmem:[%s1424_s1 + $0x8] sm:$0xff]  ;;  %v15_v2 = vld [vmem:[%s1424_s1 + $0x10] sm:$0xff]  ;;  %970 = vmatprep.subr.bf16.mxu1 %v1133_v3  ;;  %1033 = vmatprep.subr.bf16.mxu0 %v1133_v3 }
   0x2   :  { %v33_v4 = vand.u32 4294901760, %v13_v0  ;;  %v36_v5 = vand.u32 4294901760, %v14_v1  ;;  %v16_v6 = vld [vmem:[%s1424_s1 + $0x18] sm:$0xff]  ;;  %v39_v7 = vand.u32 4294901760, %v15_v2  ;;  %v17_v9 = vld [vmem:[%s1424_s1 + $0x20] sm:$0xff]  ;;  %v1172_v10 = vld [vmem:[%s1424_s1 + $0x28] sm:$0xff]  ;;  %802 = vmatprep.mubr.msk.f32.mxu1 %vm1134_vm0, %v1135_v11  ;;  %901 = vmatprep.mubr.msk.f32.mxu0 %vm1134_vm0, %v1135_v11 }
   0x3   :  { %v42_v8 = vand.u32 4294901760, %v16_v6  ;;  %v45_v14 = vand.u32 4294901760, %v17_v9  ;;  %v48_v15 = vand.u32 4294901760, %v1172_v10  ;;  %v19_v16 = vld [vmem:[%s1424_s1 + $0x30] sm:$0xff]  ;;  %v20_v17 = vld [vmem:[%s1424_s1 + $0x38] sm:$0xff] }
   0x4   :  { %v1178_v12 = vpack.c.bf16 %v36_v5, %v33_v4 }
   0x5   :  { %v1182_v13 = vpack.c.bf16 %v42_v8, %v39_v7 }
   0x6   :  { %972 = vmatpush3.bf16.msra.mxu1 %v1178_v12  ;;  %1035 = vmatpush3.bf16.msra.mxu0 %v1178_v12 }
   0x7   :  { %973 = vmatprep.subr.bf16.mxu1 %v1133_v3  ;;  %1036 = vmatprep.subr.bf16.mxu0 %v1133_v3 }
   0x8   :  { %7 = vsyncpa [#allocation3], 0  ;;  %v1195_v18 = vpack.c.bf16 %v48_v15, %v45_v14  ;;  %v51_v19 = vand.u32 4294901760, %v19_v16  ;;  %v54_v20 = vand.u32 4294901760, %v20_v17  ;;  %v12_v21 = vld [vmem:[%s1423_s0] sm:$0x3]  ;;  %v1226_v31 = vsub.f32 %v13_v0, %v33_v4 }
   0x9   :  { %v21_v22 = vld [vmem:[%s1424_s1 + $0x40] sm:$0xff]  ;;  %v22_v23 = vld [vmem:[%s1424_s1 + $0x48] sm:$0xff]  ;;  %vm28_vm1 = vcmask 982016   ;;  %v1217_v28 = vld [vmem:[%s1424_s1 + $0x50] sm:$0xff]  ;;  %v1228_v32 = vsub.f32 %v14_v1, %v36_v5  ;;  %v1248_v38 = vsub.f32 %v15_v2, %v39_v7  ;;  %v1253_v40 = vsub.f32 %v16_v6, %v42_v8 }
   0xa   :  { %975 = vmatpush3.bf16.msra.mxu1 %v1182_v13  ;;  %1038 = vmatpush3.bf16.msra.mxu0 %v1182_v13  ;;  %v30_v24 = vsel %vm28_vm1, %v12_v21, 0  ;;  %v1210_v25 = vpack.c.bf16 %v54_v20, %v51_v19  ;;  %v57_v26 = vand.u32 4294901760, %v21_v22  ;;  %v60_v27 = vand.u32 4294901760, %v22_v23  ;;  %v1222_v29 = vld [vmem:[%s1424_s1 + $0x58] sm:$0xff]  ;;  %v1241_v36 = vld [vmem:[%s1424_s1 + $0x60] sm:$0xff]  ;;  %v1246_v37 = vld [vmem:[%s1424_s1 + $0x68] sm:$0xff] }
   0xb   :  { %976 = vmatprep.subr.bf16.mxu1 %v1133_v3  ;;  %1039 = vmatprep.subr.bf16.mxu0 %v1133_v3  ;;  %v1224_v30 = vand.u32 4294901760, %v30_v24  ;;  %v63_v34 = vand.u32 4294901760, %v1217_v28  ;;  %v66_v35 = vand.u32 4294901760, %v1222_v29  ;;  %v125_v41 = vand.u32 4294901760, %v1226_v31  ;;  %v1286_v55 = vld [vmem:[%s1424_s1 + $0x70] sm:$0xff]  ;;  %s1136_s1 = smov [#allocation2]  }
   0xc   :  { %v1232_v33 = vpack.c.bf16 %v60_v27, %v57_v26  ;;  %v132_v42 = vand.u32 4294901760, %v1228_v32  ;;  %v69_v44 = vand.u32 4294901760, %v1241_v36  ;;  %v72_v45 = vand.u32 4294901760, %v1246_v37  ;;  %s668_s12 = sshll.u32 %s1136_s1, 4  ;;  %s669_s12 = int_to_ptr.vmem [resolvable:$true] %s668_s12 }
   0xd   :  { %v1251_v39 = vsub.f32 %v30_v24, %v1224_v30  ;;  %v1259_v43 = vpack.c.bf16 %v66_v35, %v63_v34  ;;  %v1265_v46 = vsub.f32 %v17_v9, %v45_v14  ;;  %v139_v48 = vand.u32 4294901760, %v1248_v38  ;;  %s1109_s13 = scalar_lea.vmem %s669_s12, 32  ;;  %p1114_p1 = scmp.lt.s32.totalorder %s669_s12, %s669_s12 }
   0xe   :  { %978 = vmatpush3.bf16.msra.mxu1 %v1195_v18  ;;  %1041 = vmatpush3.bf16.msra.mxu0 %v1195_v18  ;;  %v1270_v49 = vsub.f32 %v1172_v10, %v48_v15  ;;  %v126_v50 = vsub.f32 %v1226_v31, %v125_v41  ;;  %v133_v51 = vsub.f32 %v1228_v32, %v132_v42  ;;  %v146_v52 = vand.u32 4294901760, %v1253_v40  ;;  %p1110_p0 = scmp.ne.s32.totalorder %s669_s12, %s1109_s13  ;;  %p1115_p2 = scmp.lt.s32.totalorder %s1109_s13, %s1109_s13 }
   0xf   :  { %979 = vmatprep.subr.bf16.mxu1 %v1133_v3  ;;  %1042 = vmatprep.subr.bf16.mxu0 %v1133_v3  ;;  %v114_v47 = vand.u32 4294901760, %v1251_v39  ;;  %v1277_v53 = vpack.c.bf16 %v72_v45, %v69_v44  ;;  %v1279_v54 = vsub.f32 %v19_v16, %v51_v19  ;;  %v1288_v56 = vsub.f32 %v20_v17, %v54_v20 }
  0x10   :  { %v140_v58 = vsub.f32 %v1248_v38, %v139_v48  ;;  %v153_v59 = vand.u32 4294901760, %v1265_v46  ;;  %v127_v60 = vand.u32 4294901760, %v126_v50  ;;  %v134_v61 = vand.u32 4294901760, %v133_v51  ;;  %p1116_p3 = por %p1115_p2, %p1114_p1 }
  0x11   :  { %v115_v57 = vsub.f32 %v1251_v39, %v114_v47  ;;  %v147_v62 = vsub.f32 %v1253_v40, %v146_v52  ;;  %v160_v63 = vand.u32 4294901760, %v1270_v49  ;;  %v1298_v0 = vand.u32 4294901760, %v1286_v55 }
  0x12   :  { %981 = vmatpush3.bf16.msra.mxu1 %v1210_v25  ;;  %1044 = vmatpush3.bf16.msra.mxu0 %v1210_v25  ;;  %v1300_v1 = vsub.f32 %v21_v22, %v57_v26  ;;  %v1302_v2 = vsub.f32 %v22_v23, %v60_v27  ;;  %v1055_v4 = vpack.c.bf16 %v132_v42, %v125_v41  ;;  %v141_v6 = vand.u32 4294901760, %v140_v58  ;;  %p1117_p4 = pnand %p1116_p3, %p1110_p0 }
  0x13   :  { %982 = vmatprep.subr.bf16.mxu1 %v1133_v3  ;;  %1045 = vmatprep.subr.bf16.mxu0 %v1133_v3  ;;  %v116_v5 = vand.u32 4294901760, %v115_v57  ;;  %v154_v7 = vsub.f32 %v1265_v46, %v153_v59  ;;  %v167_v8 = vand.u32 4294901760, %v1279_v54  ;;  %v992_v9 = vpack.c.bf16 %v134_v61, %v127_v60 }
  0x14   :  { %v148_v10 = vand.u32 4294901760, %v147_v62  ;;  %v161_v14 = vsub.f32 %v1270_v49, %v160_v63  ;;  %v174_v15 = vand.u32 4294901760, %v1288_v56  ;;  %v1313_v16 = vsub.f32 %v1217_v28, %v63_v34 }
  0x15   :  { %v1316_v17 = vsub.f32 %v1222_v29, %v66_v35  ;;  %v1058_v19 = vpack.c.bf16 %v146_v52, %v139_v48  ;;  %v168_v20 = vsub.f32 %v1279_v54, %v167_v8  ;;  %v181_v21 = vand.u32 4294901760, %v1300_v1 }
  0x16   :  { %984 = vmatpush3.bf16.msra.mxu1 %v1232_v33  ;;  %1047 = vmatpush3.bf16.msra.mxu0 %v1232_v33  ;;  %v188_v22 = vand.u32 4294901760, %v1302_v2  ;;  %v995_v23 = vpack.c.bf16 %v148_v10, %v141_v6  ;;  %v155_v24 = vand.u32 4294901760, %v154_v7  ;;  %v162_v26 = vand.u32 4294901760, %v161_v14 }
  0x17   :  { %985 = vmatprep.subr.bf16.mxu1 %v1133_v3  ;;  %1048 = vmatprep.subr.bf16.mxu0 %v1133_v3  ;;  %v175_v27 = vsub.f32 %v1288_v56, %v174_v15  ;;  %v1327_v28 = vsub.f32 %v1241_v36, %v69_v44  ;;  %v1330_v29 = vsub.f32 %v1246_v37, %v72_v45  ;;  %v169_v35 = vand.u32 4294901760, %v168_v20 }
  0x18   :  { %v1061_v34 = vpack.c.bf16 %v160_v63, %v153_v59  ;;  %v182_v41 = vsub.f32 %v1300_v1, %v181_v21  ;;  %v189_v42 = vsub.f32 %v1302_v2, %v188_v22  ;;  %v195_v44 = vand.u32 4294901760, %v1313_v16 }
  0x19   :  { %v176_v36 = vand.u32 4294901760, %v175_v27  ;;  %v202_v37 = vand.u32 4294901760, %v1316_v17  ;;  %v1064_v45 = vpack.c.bf16 %v174_v15, %v167_v8  ;;  %v209_v51 = vand.u32 4294901760, %v1327_v28 }
  0x1a   :  { %987 = vmatpush3.bf16.msra.mxu1 %v1259_v43  ;;  %1050 = vmatpush3.bf16.msra.mxu0 %v1259_v43  ;;  %v183_v48 = vand.u32 4294901760, %v182_v41  ;;  %v190_v50 = vand.u32 4294901760, %v189_v42  ;;  %v196_v57 = vsub.f32 %v1313_v16, %v195_v44  ;;  %v216_v59 = vand.u32 4294901760, %v1330_v29 }
  0x1b   :  { %988 = vmatprep.subr.bf16.mxu1 %v1133_v3  ;;  %1051 = vmatprep.subr.bf16.mxu0 %v1133_v3  ;;  %v1001_v52 = vpack.c.bf16 %v176_v36, %v169_v35  ;;  %v203_v58 = vsub.f32 %v1316_v17, %v202_v37  ;;  %v1350_v60 = vsub.f32 %v1286_v55, %v1298_v0  ;;  %vm660_vm2 = vcmask 484352  }
  0x1c   :  { %v1004_v61 = vpack.c.bf16 %v190_v50, %v183_v48  ;;  %v1067_v62 = vpack.c.bf16 %v188_v22, %v181_v21  ;;  %v197_v63 = vand.u32 4294901760, %v196_v57  ;;  %v217_v6 = vsub.f32 %v1330_v29, %v216_v59 }
  0x1d   :  { %v1070_v7 = vpack.c.bf16 %v202_v37, %v195_v44  ;;  %v223_v10 = vand.u32 4294901760, %v1350_v60  ;;  %v1073_v15 = vpack.c.bf16 %v216_v59, %v209_v51  ;;  %v1013_v21 = vpack.c.bf16 %v1228_v32, %v1226_v31 }
  0x1e   :  { %990 = vmatpush3.bf16.msra.mxu1 %v1277_v53  ;;  %1053 = vmatpush3.bf16.msra.mxu0 %v1277_v53  ;;  %v1016_v22 = vpack.c.bf16 %v1253_v40, %v1248_v38  ;;  %v1019_v31 = vpack.c.bf16 %v1270_v49, %v1265_v46 }
  0x1f   :  { %800 = vmatprep.subr.mxu1 %v1135_v11  ;;  %899 = vmatprep.subr.mxu0 %v1135_v11 }
  0x22   :  { %801 = vmatpush3.msra.mxu1 %v1298_v0  ;;  %900 = vmatpush3.msra.mxu0 %v1298_v0 }
  0x23   :  { %991 = vmatprep.subr.bf16.mxu1 %v1133_v3  ;;  %1054 = vmatprep.subr.bf16.mxu0 %v1133_v3 }
  0x24   :  { %803 = vmatmul.mubr.f32.vlgmr.msra.gmra.mrb[0].mxu1 %v116_v5  ;;  %902 = vmatmul.mubr.f32.vlgmr.msra.gmra.mrb[0].mxu0 %v114_v47  ;;  %v998_v47 = vpack.c.bf16 %v162_v26, %v155_v24  ;;  %v210_v5 = vsub.f32 %v1327_v28, %v209_v51 }
  0x25   :  { %993 = vmatpush3.bf16.msra.mxu1 %v992_v9  ;;  %1056 = vmatpush3.bf16.msra.mxu0 %v1055_v4  ;;  %v204_v4 = vand.u32 4294901760, %v203_v58  ;;  %v218_v9 = vand.u32 4294901760, %v217_v6 }
  0x26   :  { %994 = vmatprep.subr.bf16.mxu1 %v1133_v3  ;;  %1057 = vmatprep.subr.bf16.mxu0 %v1133_v3  ;;  %v211_v55 = vand.u32 4294901760, %v210_v5 }
  0x27   :  { %835 = vmatprep.mubr.msk.f32.mxu1 %vm1134_vm0, %v1135_v11  ;;  %934 = vmatprep.mubr.msk.f32.mxu0 %vm1134_vm0, %v1135_v11  ;;  %v1007_v8 = vpack.c.bf16 %v204_v4, %v197_v63 }
  0x28   :  { %v1010_v14 = vpack.c.bf16 %v218_v9, %v211_v55 }
  0x29   :  { %996 = vmatpush3.bf16.msra.mxu1 %v995_v23  ;;  %1059 = vmatpush3.bf16.msra.mxu0 %v1058_v19  ;;  %v224_v19 = vsub.f32 %v1350_v60, %v223_v10 }
  0x2a   :  { %997 = vmatprep.subr.bf16.mxu1 %v1133_v3  ;;  %1060 = vmatprep.subr.bf16.mxu0 %v1133_v3 }
  0x2b   :  { %v225_v20 = vand.u32 4294901760, %v224_v19 }
  0x2d   :  { %999 = vmatpush3.bf16.msra.mxu1 %v998_v47  ;;  %1062 = vmatpush3.bf16.msra.mxu0 %v1061_v34 }
  0x2e   :  { %1000 = vmatprep.subr.bf16.mxu1 %v1133_v3  ;;  %1063 = vmatprep.subr.bf16.mxu0 %v1133_v3 }
  0x31   :  { %1002 = vmatpush3.bf16.msra.mxu1 %v1001_v52  ;;  %1065 = vmatpush3.bf16.msra.mxu0 %v1064_v45 }
  0x32   :  { %1003 = vmatprep.subr.bf16.mxu1 %v1133_v3  ;;  %1066 = vmatprep.subr.bf16.mxu0 %v1133_v3 }
  0x35   :  { %1005 = vmatpush3.bf16.msra.mxu1 %v1004_v61  ;;  %1068 = vmatpush3.bf16.msra.mxu0 %v1067_v62 }
  0x36   :  { %1006 = vmatprep.subr.bf16.mxu1 %v1133_v3  ;;  %1069 = vmatprep.subr.bf16.mxu0 %v1133_v3 }
  0x39   :  { %1008 = vmatpush3.bf16.msra.mxu1 %v1007_v8  ;;  %1071 = vmatpush3.bf16.msra.mxu0 %v1070_v7 }
  0x3a   :  { %1009 = vmatprep.subr.bf16.mxu1 %v1133_v3  ;;  %1072 = vmatprep.subr.bf16.mxu0 %v1133_v3 }
  0x3d   :  { %1011 = vmatpush3.bf16.msra.mxu1 %v1010_v14  ;;  %1074 = vmatpush3.bf16.msra.mxu0 %v1073_v15 }
  0x3e   :  { %833 = vmatprep.subr.mxu1 %v1135_v11  ;;  %932 = vmatprep.subr.mxu0 %v1135_v11 }
  0x41   :  { %834 = vmatpush3.msra.mxu1 %v225_v20  ;;  %933 = vmatpush3.msra.mxu0 %v223_v10 }
  0x42   :  { %1012 = vmatprep.subr.bf16.mxu1 %v1133_v3  ;;  %1075 = vmatprep.subr.bf16.mxu0 %v1133_v3 }
  0x43   :  { %836 = vmatmul.mubr.f32.vlgmr.msra.gmra.mrb[0].mxu1 %v1224_v30  ;;  %935 = vmatmul.mubr.f32.vlgmr.msra.gmra.mrb[0].mxu0 %v1224_v30 }
  0x44   :  { %1014 = vmatpush3.bf16.msra.mxu1 %v1013_v21  ;;  %1077 = vmatpush3.bf16.msra.mxu0 %v1178_v12  ;;  %v1022_v12 = vpack.c.bf16 %v1288_v56, %v1279_v54 }
  0x45   :  { %1015 = vmatprep.subr.bf16.mxu1 %v1133_v3  ;;  %1078 = vmatprep.subr.bf16.mxu0 %v1133_v3 }
  0x46   :  { %868 = vmatprep.mubr.msk.f32.mxu1 %vm1134_vm0, %v1135_v11  ;;  %967 = vmatprep.mubr.msk.f32.mxu0 %vm1134_vm0, %v1135_v11 }
  0x48   :  { %1017 = vmatpush3.bf16.msra.mxu1 %v1016_v22  ;;  %1080 = vmatpush3.bf16.msra.mxu0 %v1182_v13  ;;  %v1025_v13 = vpack.c.bf16 %v1302_v2, %v1300_v1 }
  0x49   :  { %1018 = vmatprep.subr.bf16.mxu1 %v1133_v3  ;;  %1081 = vmatprep.subr.bf16.mxu0 %v1133_v3 }
  0x4c   :  { %1020 = vmatpush3.bf16.msra.mxu1 %v1019_v31  ;;  %1083 = vmatpush3.bf16.msra.mxu0 %v1195_v18  ;;  %v1028_v18 = vpack.c.bf16 %v1316_v17, %v1313_v16 }
  0x4d   :  { %1021 = vmatprep.subr.bf16.mxu1 %v1133_v3  ;;  %1084 = vmatprep.subr.bf16.mxu0 %v1133_v3 }
  0x50   :  { %1023 = vmatpush3.bf16.msra.mxu1 %v1022_v12  ;;  %1086 = vmatpush3.bf16.msra.mxu0 %v1210_v25  ;;  %v1031_v25 = vpack.c.bf16 %v1330_v29, %v1327_v28 }
  0x51   :  { %1024 = vmatprep.subr.bf16.mxu1 %v1133_v3  ;;  %1087 = vmatprep.subr.bf16.mxu0 %v1133_v3 }
  0x54   :  { %1026 = vmatpush3.bf16.msra.mxu1 %v1025_v13  ;;  %1089 = vmatpush3.bf16.msra.mxu0 %v1232_v33 }
  0x55   :  { %1027 = vmatprep.subr.bf16.mxu1 %v1133_v3  ;;  %1090 = vmatprep.subr.bf16.mxu0 %v1133_v3 }
  0x58   :  { %1029 = vmatpush3.bf16.msra.mxu1 %v1028_v18  ;;  %1092 = vmatpush3.bf16.msra.mxu0 %v1259_v43 }
  0x59   :  { %1030 = vmatprep.subr.bf16.mxu1 %v1133_v3  ;;  %1093 = vmatprep.subr.bf16.mxu0 %v1133_v3 }
  0x5c   :  { %1032 = vmatpush3.bf16.msra.mxu1 %v1031_v25  ;;  %1095 = vmatpush3.bf16.msra.mxu0 %v1277_v53 }
  0x5d   :  { %866 = vmatprep.subr.mxu1 %v1135_v11  ;;  %965 = vmatprep.subr.mxu0 %v1135_v11 }
  0x60   :  { %867 = vmatpush3.msra.mxu1 %v1350_v60  ;;  %966 = vmatpush3.msra.mxu0 %v1298_v0 }
  0x61   :  { %869 = vmatmul.mubr.f32.vlgmr.msra.gmra.mrb[0].mxu1 %v1251_v39  ;;  %968 = vmatmul.mubr.f32.vlgmr.msra.gmra.mrb[0].mxu0 %v1224_v30 }
 0x134   :  { %v366_v32 = vpop.f32.mrb[0].mxu1  ;;  %v656_v33 = vpop.f32.mrb[0].mxu0 }
 0x135   :  { %v1096_v3 = vadd.f32 %v656_v33, %v366_v32  ;;  %v870_v38 = vpop.f32.mrb[1].mxu1  ;;  %v969_v40 = vpop.f32.mrb[1].mxu0 }
 0x137   :  { %661 = vst.msk [vmem:[#allocation2] sm:$0x3] %vm660_vm2, %v1096_v3 }
 0x138   :  { %1120 = shalt.err (!%p1117_p4)
}
 0x139   :  { %s1121_s16 = scalar_lea.hbm %s1425_s2, 32 }
 0x13a   :  { %p1122_p5 = scmp.ne.s32.totalorder %s1425_s2, %s1121_s16  ;;  %p1125_p6 = scmp.lt.u32.totalorder %s1121_s16, %s1425_s2 }
 0x13c   :  { %p1127_p7 = pnand %p1125_p6, %p1122_p5 }
 0x13e   :  { %1130 = shalt.err (!%p1127_p7)
}
 0x13f   :  { %671 = dma.vmem_to_hbm [thread:$0]  %s669_s12, 32, %s1425_s2, [#allocation3]  }
 0x140   :  { %1131 = dma.done.wait [#allocation3], 32  }
 0x141   :  { %1132 = vsyncadd [#allocation3], 4294967264 }
 0x142   :  { %675 = vsyncpa [#allocation3], 1 }

</bundles_post_ra>
